<compile_context>
chip_gen: v5e
topology: v5e:2x2
jax: 0.10.0
libtpu: 0.0.40
codegen_flags: <defaults>
</compile_context>

<pallas_src>
import jax
import jax.numpy as jnp
from jax.experimental import pallas as pl
from jax.experimental.pallas import tpu as pltpu


def _round_up(a, m):
    return ((a + m - 1) // m) * m


def _device_defaults():
    """Pick PACK (rows packed along lanes) and #stat cores per TPU generation."""
    kind = ""
    try:
        kind = jax.devices()[0].device_kind.lower()
    except Exception:
        pass
    old_gen = any(t in kind for t in ("v2", "v3", "v4", "v5"))
    pack = 4 if old_gen else 8          # 128-wide MXU -> 4, 256-wide MXU -> 8
    num_stat_cores = 2 if "v7" in kind else 1   # only v7x has 2 TCs / chip
    return pack, num_stat_cores


# ---------------- Pass 1: per-channel sum / sum-of-squares of y0 = x @ Wblk --


def _make_stats_kernel(tm, steps, mp_valid, need_mask):
    def stats_kernel(x_ref, w_ref, stats_ref):
        i = pl.program_id(1)

        @pl.when(i == 0)
        def _():
            stats_ref[...] = jnp.zeros_like(stats_ref)

        x = x_ref[...]
        if need_mask:
            # Ragged tail / duplicated (clamped) blocks: zero invalid packed
            # rows so they contribute exactly 0 to the statistics.
            c = pl.program_id(0)
            row0 = (c * steps + i) * tm
            rows = row0 + jax.lax.broadcasted_iota(jnp.int32, (tm, 1), 0)
            x = jnp.where(rows < mp_valid, x, 0.0)

        y0 = jnp.dot(x, w_ref[...], preferred_element_type=jnp.float32)
        stats_ref[0:1, :] += jnp.sum(y0, axis=0, keepdims=True)
        stats_ref[1:2, :] += jnp.sum(y0 * y0, axis=0, keepdims=True)

    return stats_kernel


# ---------------- Pass 2: fused linear + folded BN + ReLU --------------------


def _linear_bn_relu_kernel(x_ref, w_ref, shift_ref, out_ref):
    # BN scale is pre-folded into the weight columns; epilogue = add + relu.
    y0 = jnp.dot(x_ref[...], w_ref[...], preferred_element_type=jnp.float32)
    out_ref[...] = jnp.maximum(y0 + shift_ref[...], 0.0)


# ---------------- Wrapper ----------------------------------------------------


def cur_embedding_forward(x, W, b, gamma, beta, *, eps=1e-5, tm=4096,
                          pack=None, num_stat_cores=None):
    B, L, in_dim = x.shape
    dim = W.shape[0]
    M = B * L

    d_pack, d_cores = _device_defaults()
    pack = d_pack if pack is None else pack
    num_stat_cores = d_cores if num_stat_cores is None else num_stat_cores

    in_p = pack * in_dim     # packed input width  (lanes)
    out_p = pack * dim       # packed output width (lanes)

    # --- packing plan: only pad to a multiple of PACK (often a no-op) ---
    m_pad = _round_up(M, pack)
    mp = m_pad // pack                        # packed rows

    xf = x.reshape(M, in_dim).astype(jnp.float32)
    if m_pad != M:
        xf = jnp.pad(xf, ((0, m_pad - M), (0, 0)))   # zero rows -> 0 stats
    xp = xf.reshape(mp, in_p)                 # PACK rows per lane-row (free)

    wt = W.T.astype(jnp.float32)                                  # (in_dim, dim)
    w_blk = jnp.kron(jnp.eye(pack, dtype=jnp.float32), wt)        # (in_p, out_p)

    # --- tile plan (packed rows) ---
    tm = max(8, int(tm))
    if tm >= mp:
        tm_eff = mp                           # single block == full array dim
    else:
        tm_eff = max(8, (tm // 8) * 8)        # multiple of 8, ragged tail OK
    nblocks = pl.cdiv(mp, tm_eff)
    num_stat_cores = max(1, min(num_stat_cores, nblocks))
    steps = pl.cdiv(nblocks, num_stat_cores)
    need_mask = (num_stat_cores * steps * tm_eff) != mp

    # VMEM budget from the actual (double-buffered) working set, capped 48 MiB.
    need_bytes = 2 * (tm_eff * in_p * 4 + tm_eff * out_p * 4) \
        + in_p * out_p * 4 + (2 << 20)
    vmem_limit = int(min(max(need_bytes, 32 << 20), 48 << 20))

    # Pass-1 x index map; clamp only when the core split creates extra blocks
    # (those blocks are fully masked inside the kernel).
    if num_stat_cores * steps > nblocks:
        def x_map_p1(c, i):
            return (jnp.minimum(c * steps + i, nblocks - 1), 0)
    else:
        def x_map_p1(c, i):
            return (c * steps + i, 0)

    # --- pass 1: per-core partial stats of y0 (bias excluded) ---
    stats_parts = pl.pallas_call(
        _make_stats_kernel(tm_eff, steps, mp, need_mask),
        out_shape=jax.ShapeDtypeStruct((num_stat_cores, 2, out_p), jnp.float32),
        grid_spec=pltpu.PrefetchScalarGridSpec(
            num_scalar_prefetch=0,
            grid=(num_stat_cores, steps),
            in_specs=[
                pl.BlockSpec((tm_eff, in_p), x_map_p1),
                pl.BlockSpec((in_p, out_p), lambda c, i: (0, 0)),
            ],
            out_specs=pl.BlockSpec((None, 2, out_p), lambda c, i: (c, 0, 0)),
        ),
        compiler_params=pltpu.CompilerParams(
            dimension_semantics=("parallel", "arbitrary"),
            vmem_limit_bytes=vmem_limit),
    )(xp, w_blk)

    # --- tiny XLA glue: combine partials, fold BN into the pass-2 weights ---
    stats = jnp.sum(stats_parts, axis=0) if num_stat_cores > 1 else stats_parts[0]
    sum0 = jnp.sum(stats[0].reshape(pack, dim), axis=0)        # per channel
    sumsq0 = jnp.sum(stats[1].reshape(pack, dim), axis=0)
    n = jnp.float32(M)
    mean0 = sum0 / n                                           # mean of y0
    var = jnp.maximum(sumsq0 / n - mean0 * mean0, 0.0)         # == var of y
    scale = gamma.astype(jnp.float32) * jax.lax.rsqrt(var + jnp.float32(eps))
    # out = (y0 + b - (mean0 + b))*scale + beta = y0*scale + (beta - mean0*scale)
    # (the Linear bias b cancels exactly inside BatchNorm.)
    shift = beta.astype(jnp.float32) - mean0 * scale

    scale_p = jnp.tile(scale, pack).reshape(1, out_p)
    shift_p = jnp.tile(shift, pack).reshape(1, out_p)
    w_blk2 = w_blk * scale_p        # fold BN scale into the weights (columns)

    # --- pass 2: fused linear + folded BN + ReLU, fully parallel grid ---
    out_packed = pl.pallas_call(
        _linear_bn_relu_kernel,
        out_shape=jax.ShapeDtypeStruct((mp, out_p), jnp.float32),
        grid_spec=pltpu.PrefetchScalarGridSpec(
            num_scalar_prefetch=0,
            grid=(nblocks,),
            in_specs=[
                pl.BlockSpec((tm_eff, in_p), lambda i: (i, 0)),
                pl.BlockSpec((in_p, out_p), lambda i: (0, 0)),
                pl.BlockSpec((1, out_p), lambda i: (0, 0)),
            ],
            out_specs=pl.BlockSpec((tm_eff, out_p), lambda i: (i, 0)),
        ),
        compiler_params=pltpu.CompilerParams(
            dimension_semantics=("parallel",),
            vmem_limit_bytes=vmem_limit),
    )(xp, w_blk2, shift_p)

    out = out_packed.reshape(m_pad, dim)    # free (contiguous) unpack
    if m_pad != M:
        out = out[:M]
    return out.reshape(B, L, dim)


# ---------------- Pure-JAX reference -----------------------------------------


def reference_forward(x, W, b, gamma, beta, eps=1e-5):
    y = jnp.einsum("bli,di->bld", x, W) + b                    # Linear
    m = y.reshape(-1, y.shape[-1])
    mean = jnp.mean(m, axis=0)
    var = jnp.mean((m - mean) ** 2, axis=0)                    # biased (BN fwd)
    yn = (y - mean) * jax.lax.rsqrt(var + eps) * gamma + beta
    return jnp.maximum(yn, 0.0)


if __name__ == "__main__":
    B, L, INPUT_DIM, DIM = 2, 8, 16, 32

    key = jax.random.PRNGKey(0)
    kx, kw, kb = jax.random.split(key, 3)

    x = jax.random.normal(kx, (B, L, INPUT_DIM), dtype=jnp.float32)

    # PyTorch nn.Linear default init: U(-1/sqrt(in), 1/sqrt(in)) for W and b.
    bound = 1.0 / (INPUT_DIM ** 0.5)
    W = jax.random.uniform(kw, (DIM, INPUT_DIM), minval=-bound, maxval=bound,
                           dtype=jnp.float32)
    b = jax.random.uniform(kb, (DIM,), minval=-bound, maxval=bound,
                           dtype=jnp.float32)
    # BatchNorm1d default affine params.
    gamma = jnp.ones((DIM,), dtype=jnp.float32)
    beta = jnp.zeros((DIM,), dtype=jnp.float32)

    out = cur_embedding_forward(x, W, b, gamma, beta)
    out = jax.block_until_ready(out)

    ref = reference_forward(x, W, b, gamma, beta)
    assert out.shape == (B, L, DIM)
    assert jnp.allclose(out, ref, atol=1e-4, rtol=1e-4), "mismatch vs reference"

    print("KERNEL_OK")
</pallas_src>

<mosaic_0001>
module attributes {stable_mosaic.version = 11 : i64} {
  func.func @stats_kernel(%arg0: i32, %arg1: i32, %arg2: memref<2x128xf32, #tpu.memory_space<vmem>>, %arg3: memref<128x256xf32, #tpu.memory_space<vmem>>, %arg4: memref<1x2x256xf32, #tpu.memory_space<vmem>>) attributes {dimension_semantics = [#tpu.dimension_semantics<parallel>, #tpu.dimension_semantics<arbitrary>], iteration_bounds = array<i64: 1, 1>, scalar_prefetch = 0 : i64, scratch_operands = 0 : i64, tpu.core_type = #tpu.core_type<tc>, window_params = [{transform_indices = @transform_0, window_bounds = array<i64: 2, 128>}, {pipeline_mode = #tpu.pipeline_mode<synchronous>, transform_indices = @transform_1, window_bounds = array<i64: 128, 256>}, {transform_indices = @transform_2, window_bounds = array<i64: 1, 2, 256>}]} {
    %c0_i32 = arith.constant 0 : i32
    %0 = arith.cmpi eq, %arg1, %c0_i32 : i32
    %1 = arith.extui %0 : i1 to i32
    %c0_i32_0 = arith.constant 0 : i32
    %2 = arith.cmpi ne, %1, %c0_i32_0 : i32
    scf.if %2 {
      %cst_17 = arith.constant 0.000000e+00 : f32
      %23 = vector.broadcast %cst_17 : f32 to vector<2x256xf32>
      %c0_18 = arith.constant 0 : index
      %c0_19 = arith.constant 0 : index
      %c0_20 = arith.constant 0 : index
      %24 = vector.load %arg4[%c0_18, %c0_19, %c0_20] : memref<1x2x256xf32, #tpu.memory_space<vmem>>, vector<1x2x256xf32>
      %25 = vector.shape_cast %24 : vector<1x2x256xf32> to vector<2x256xf32>
      %26 = vector.shape_cast %23 : vector<2x256xf32> to vector<1x2x256xf32>
      tpu.vector_store %arg4[%c0_18, %c0_19, %c0_20], %26 {strides = array<i32>} : memref<1x2x256xf32, #tpu.memory_space<vmem>>, vector<1x2x256xf32>,
    } else {
    }
    %c0 = arith.constant 0 : index
    %c0_1 = arith.constant 0 : index
    %3 = vector.load %arg2[%c0, %c0_1] : memref<2x128xf32, #tpu.memory_space<vmem>>, vector<2x128xf32>
    %c0_2 = arith.constant 0 : index
    %c0_3 = arith.constant 0 : index
    %4 = vector.load %arg3[%c0_2, %c0_3] : memref<128x256xf32, #tpu.memory_space<vmem>>, vector<128x256xf32>
    %cst = arith.constant dense<0.000000e+00> : vector<2x256xf32>
    %5 = tpu.matmul %3, %4, %cst {dimension_numbers = #tpu.dot_dimension_numbers<[1], [0], [0], [1], [0, 0, 1, 1], [], []>} : vector<2x128xf32>, vector<128x256xf32>, vector<2x256xf32> -> vector<2x256xf32>
    %c0_4 = arith.constant 0 : index
    %c0_5 = arith.constant 0 : index
    %c0_6 = arith.constant 0 : index
    %6 = vector.load %arg4[%c0_4, %c0_5, %c0_6] : memref<1x2x256xf32, #tpu.memory_space<vmem>>, vector<1x1x256xf32>
    %7 = vector.shape_cast %6 : vector<1x1x256xf32> to vector<1x256xf32>
    %cst_7 = arith.constant dense<0.000000e+00> : vector<256xf32>
    %8 = vector.multi_reduction <add>, %5, %cst_7 [0] : vector<2x256xf32> to vector<256xf32>
    %9 = vector.shape_cast %8 : vector<256xf32> to vector<1x256xf32>
    %10 = arith.addf %7, %9 : vector<1x256xf32>
    %c0_8 = arith.constant 0 : index
    %c0_9 = arith.constant 0 : index
    %c0_10 = arith.constant 0 : index
    %11 = vector.load %arg4[%c0_8, %c0_9, %c0_10] : memref<1x2x256xf32, #tpu.memory_space<vmem>>, vector<1x1x256xf32>
    %12 = vector.shape_cast %11 : vector<1x1x256xf32> to vector<1x256xf32>
    %13 = vector.shape_cast %10 : vector<1x256xf32> to vector<1x1x256xf32>
    tpu.vector_store %arg4[%c0_8, %c0_9, %c0_10], %13 {strides = array<i32>} : memref<1x2x256xf32, #tpu.memory_space<vmem>>, vector<1x1x256xf32>,
    %c0_11 = arith.constant 0 : index
    %c1 = arith.constant 1 : index
    %c0_12 = arith.constant 0 : index
    %14 = vector.load %arg4[%c0_11, %c1, %c0_12] : memref<1x2x256xf32, #tpu.memory_space<vmem>>, vector<1x1x256xf32>
    %15 = vector.shape_cast %14 : vector<1x1x256xf32> to vector<1x256xf32>
    %16 = arith.mulf %5, %5 : vector<2x256xf32>
    %cst_13 = arith.constant dense<0.000000e+00> : vector<256xf32>
    %17 = vector.multi_reduction <add>, %16, %cst_13 [0] : vector<2x256xf32> to vector<256xf32>
    %18 = vector.shape_cast %17 : vector<256xf32> to vector<1x256xf32>
    %19 = arith.addf %15, %18 : vector<1x256xf32>
    %c0_14 = arith.constant 0 : index
    %c1_15 = arith.constant 1 : index
    %c0_16 = arith.constant 0 : index
    %20 = vector.load %arg4[%c0_14, %c1_15, %c0_16] : memref<1x2x256xf32, #tpu.memory_space<vmem>>, vector<1x1x256xf32>
    %21 = vector.shape_cast %20 : vector<1x1x256xf32> to vector<1x256xf32>
    %22 = vector.shape_cast %19 : vector<1x256xf32> to vector<1x1x256xf32>
    tpu.vector_store %arg4[%c0_14, %c1_15, %c0_16], %22 {strides = array<i32>} : memref<1x2x256xf32, #tpu.memory_space<vmem>>, vector<1x1x256xf32>,
    return
  }
  func.func @transform_0(%arg0: i32, %arg1: i32) -> (i32, i32) {
    %c1_i32 = arith.constant 1 : i32
    %0 = arith.muli %arg0, %c1_i32 : i32
    %1 = arith.addi %0, %arg1 : i32
    %c0_i32 = arith.constant 0 : i32
    %c0_i32_0 = arith.constant 0 : i32
    return %1, %c0_i32 : i32, i32
  }
  func.func @transform_1(%arg0: i32, %arg1: i32) -> (i32, i32) {
    %c0_i32 = arith.constant 0 : i32
    %c0_i32_0 = arith.constant 0 : i32
    %c0_i32_1 = arith.constant 0 : i32
    return %c0_i32, %c0_i32_0 : i32, i32
  }
  func.func @transform_2(%arg0: i32, %arg1: i32) -> (i32, i32, i32) {
    %c0_i32 = arith.constant 0 : i32
    %c0_i32_0 = arith.constant 0 : i32
    %c0_i32_1 = arith.constant 0 : i32
    return %arg0, %c0_i32, %c0_i32_0 : i32, i32, i32
  }
}

</mosaic_0001>

<bundles_post_ra>
// kernel: tpu_custom_call.1
= control target key start
LH: loop header
LB: loop body
LE: loop exit
PB: predicated region body
PF: predicated region fallthrough
CT: control target
= control target key end

     0   :  { %7 = vsyncpa [#allocation3], 0  ;;  %s309_s0 = inlined_call_operand.hbm [shape: f32[2,128], index: 0, kind: input, shape index: {}]   ;;  %s310_s1 = inlined_call_operand.hbm [shape: f32[128,256], index: 1, kind: input, shape index: {}]   ;;  %s311_s2 = inlined_call_operand.hbm [shape: f32[1,2,256], index: 2, kind: output, shape index: {}]  }
   0x1   :  { %8 = vsyncpa [#allocation6], 0 }
   0x2   :  { %9 = vsyncpa [#allocation4], 0  ;;  %s18_s11 = sshll.u32 %s309_s0, 4  ;;  %s279_s12 = smov [#allocation2]   ;;  %s19_s11 = int_to_ptr.hbm [resolvable:$true] %s18_s11 }
   0x3   :  { %s20_s13 = sshll.u32 %s279_s12, 4  ;;  %s28_s16 = sshll.u32 %s310_s1, 4  ;;  %s21_s13 = int_to_ptr.vmem [resolvable:$true] %s20_s13  ;;  %s29_s16 = int_to_ptr.hbm [resolvable:$true] %s28_s16 }
   0x4   :  { %23 = dma.hbm_to_vmem [thread:$0]  %s19_s11, 32, %s21_s13, [#allocation3]  }
   0x5   :  { %s280_s17 = smov [#allocation5]   ;;  %s281_s19 = smov 256  }
   0x6   :  { %s30_s18 = sshll.u32 %s280_s17, 4  ;;  %s282_s20 = smov 16   ;;  %s31_s18 = int_to_ptr.vmem [resolvable:$true] %s30_s18 }
   0x7   :  { %36 = dma.hbm_to_vmem [thread:$0]  %s29_s16, 4096, %s31_s18, [#allocation6], %s281_s19, %s281_s19, %s282_s20  }
   0x8   :  { %273 = dma.done.wait [#allocation3], 32  }
   0x9   :  { %274 = vsyncadd [#allocation3], 4294967264 }
   0xa   :  { %275 = dma.done.wait [#allocation6], 4096  }
   0xb   :  { %276 = vsyncadd [#allocation6], 4294963200  ;;  %v82_v0 = vld [vmem:[#allocation5 + $0xf0] sm:$0xff]  ;;  %v83_v1 = vld [vmem:[#allocation5 + $0xf8] sm:$0xff]  ;;  %v283_v33 = vmov 0.0   ;;  %vm125_vm0 = vcmask 1041408   ;;  %v147_v63 = vlaneseq }
   0xc   :  { %v80_v2 = vld [vmem:[#allocation5 + $0xe0] sm:$0xff]  ;;  %84 = vmatpush.msra.mxu0 %v82_v0  ;;  %104 = vmatpush.msra.mxu1 %v83_v1  ;;  %v81_v3 = vld [vmem:[#allocation5 + $0xe8] sm:$0xff]  ;;  %v78_v4 = vld [vmem:[#allocation5 + $0xd0] sm:$0xff]  ;;  %50 = vst [vmem:[#allocation7] sm:$0xf] %v283_v33  ;;  %vm143_vm1 = vcmask 1040384  }
   0xd   :  { %v79_v5 = vld [vmem:[#allocation5 + $0xd8] sm:$0xff]  ;;  %v76_v6 = vld [vmem:[#allocation5 + $0xc0] sm:$0xff]  ;;  %v77_v7 = vld [vmem:[#allocation5 + $0xc8] sm:$0xff]  ;;  %s284_s0 = smov [#allocation7]   ;;  %vm149_vm2 = vcmp.lt.s32.totalorder %v147_v63, 256  ;;  %s184_s23 = sshll.u32 %s311_s2, 4  ;;  %s185_s23 = int_to_ptr.hbm [resolvable:$true] %s184_s23 }
   0xe   :  { %85 = vmatpush.msra.mxu0 %v80_v2  ;;  %105 = vmatpush.msra.mxu1 %v81_v3  ;;  %v74_v8 = vld [vmem:[#allocation5 + $0xb0] sm:$0xff]  ;;  %v75_v9 = vld [vmem:[#allocation5 + $0xb8] sm:$0xff]  ;;  %v72_v10 = vld [vmem:[#allocation5 + $0xa0] sm:$0xff]  ;;  %s182_s1 = sshll.u32 %s284_s0, 4  ;;  %s183_s1 = int_to_ptr.vmem [resolvable:$true] %s182_s1 }
   0xf   :  { %v73_v11 = vld [vmem:[#allocation5 + $0xa8] sm:$0xff]  ;;  %v70_v12 = vld [vmem:[#allocation5 + $0x90] sm:$0xff]  ;;  %v71_v13 = vld [vmem:[#allocation5 + $0x98] sm:$0xff] }
  0x10   :  { %86 = vmatpush.msra.mxu0 %v78_v4  ;;  %106 = vmatpush.msra.mxu1 %v79_v5  ;;  %v68_v14 = vld [vmem:[#allocation5 + $0x80] sm:$0xff]  ;;  %v69_v15 = vld [vmem:[#allocation5 + $0x88] sm:$0xff]  ;;  %v66_v16 = vld [vmem:[#allocation5 + $0x70] sm:$0xff] }
  0x11   :  { %v67_v17 = vld [vmem:[#allocation5 + $0x78] sm:$0xff]  ;;  %v64_v18 = vld [vmem:[#allocation5 + $0x60] sm:$0xff]  ;;  %v65_v19 = vld [vmem:[#allocation5 + $0x68] sm:$0xff] }
  0x12   :  { %87 = vmatpush.msra.mxu0 %v76_v6  ;;  %107 = vmatpush.msra.mxu1 %v77_v7  ;;  %v62_v20 = vld [vmem:[#allocation5 + $0x50] sm:$0xff]  ;;  %v63_v21 = vld [vmem:[#allocation5 + $0x58] sm:$0xff]  ;;  %v60_v22 = vld [vmem:[#allocation5 + $0x40] sm:$0xff] }
  0x13   :  { %v61_v23 = vld [vmem:[#allocation5 + $0x48] sm:$0xff]  ;;  %v58_v24 = vld [vmem:[#allocation5 + $0x30] sm:$0xff]  ;;  %v59_v25 = vld [vmem:[#allocation5 + $0x38] sm:$0xff] }
  0x14   :  { %88 = vmatpush.msra.mxu0 %v74_v8  ;;  %108 = vmatpush.msra.mxu1 %v75_v9  ;;  %v56_v26 = vld [vmem:[#allocation5 + $0x20] sm:$0xff]  ;;  %v57_v27 = vld [vmem:[#allocation5 + $0x28] sm:$0xff]  ;;  %v54_v28 = vld [vmem:[#allocation5 + $0x10] sm:$0xff] }
  0x15   :  { %v55_v29 = vld [vmem:[#allocation5 + $0x18] sm:$0xff]  ;;  %v52_v30 = vld [vmem:[#allocation5] sm:$0xff]  ;;  %v53_v31 = vld [vmem:[#allocation5 + $0x8] sm:$0xff] }
  0x16   :  { %89 = vmatpush.msra.mxu0 %v72_v10  ;;  %109 = vmatpush.msra.mxu1 %v73_v11  ;;  %v51_v32 = vld [vmem:[#allocation2] sm:$0x3]  ;;  %v124_v1 = vld [vmem:[#allocation7] ss:$2 sm:$0x3] }
  0x17   :  { %v153_v7 = vld [vmem:[#allocation7 + $0x1] ss:$2 sm:$0x3] }
  0x18   :  { %90 = vmatpush.msra.mxu0 %v70_v12  ;;  %110 = vmatpush.msra.mxu1 %v71_v13 }
  0x1a   :  { %91 = vmatpush.msra.mxu0 %v68_v14  ;;  %111 = vmatpush.msra.mxu1 %v69_v15 }
  0x1c   :  { %92 = vmatpush.msra.mxu0 %v66_v16  ;;  %112 = vmatpush.msra.mxu1 %v67_v17 }
  0x1e   :  { %93 = vmatpush.msra.mxu0 %v64_v18  ;;  %113 = vmatpush.msra.mxu1 %v65_v19 }
  0x20   :  { %94 = vmatpush.msra.mxu0 %v62_v20  ;;  %114 = vmatpush.msra.mxu1 %v63_v21 }
  0x22   :  { %95 = vmatpush.msra.mxu0 %v60_v22  ;;  %115 = vmatpush.msra.mxu1 %v61_v23 }
  0x24   :  { %96 = vmatpush.msra.mxu0 %v58_v24  ;;  %116 = vmatpush.msra.mxu1 %v59_v25 }
  0x26   :  { %97 = vmatpush.msra.mxu0 %v56_v26  ;;  %117 = vmatpush.msra.mxu1 %v57_v27 }
  0x28   :  { %98 = vmatpush.msra.mxu0 %v54_v28  ;;  %118 = vmatpush.msra.mxu1 %v55_v29 }
  0x2a   :  { %99 = vmatpush.msra.mxu0 %v52_v30  ;;  %119 = vmatpush.msra.mxu1 %v53_v31 }
  0x2b   :  { %100 = vmatmul.f32.vlgmr.msra.gmra.mxu0 %v51_v32  ;;  %120 = vmatmul.f32.vlgmr.msra.gmra.mxu1 %v51_v32 }
  0xa8   :  { %v101_v34 = vpop.f32.mrf.mxu0  ;;  %v121_v35 = vpop.f32.mrf.mxu1 }
  0xa9   :  { %v126_v36 = vsel %vm125_vm0, %v101_v34, 0.0  ;;  %v154_v37 = vmul.f32 %v101_v34, %v101_v34  ;;  %v133_v38 = vsel %vm125_vm0, %v121_v35, 0.0  ;;  %v155_v39 = vmul.f32 %v121_v35, %v121_v35 }
  0xaa   :  { %v127_v40 = vrot.slane %v126_v36, 4  ;;  %v134_v41 = vrot.slane %v133_v38, 4 }
  0xab   :  { %v156_v42 = vsel %vm125_vm0, %v154_v37, 0.0  ;;  %v163_v43 = vsel %vm125_vm0, %v155_v39, 0.0 }
  0xac   :  { %v128_v44 = vadd.f32 %v127_v40, %v126_v36  ;;  %v157_v45 = vrot.slane %v156_v42, 4  ;;  %v135_v46 = vadd.f32 %v134_v41, %v133_v38  ;;  %v164_v47 = vrot.slane %v163_v43, 4 }
  0xae   :  { %v129_v48 = vrot.slane %v128_v44, 2  ;;  %v158_v49 = vadd.f32 %v157_v45, %v156_v42  ;;  %v136_v50 = vrot.slane %v135_v46, 2  ;;  %v165_v51 = vadd.f32 %v164_v47, %v163_v43 }
  0xb0   :  { %v130_v52 = vadd.f32 %v129_v48, %v128_v44  ;;  %v159_v53 = vrot.slane %v158_v49, 2  ;;  %v137_v54 = vadd.f32 %v136_v50, %v135_v46  ;;  %v166_v55 = vrot.slane %v165_v51, 2 }
  0xb2   :  { %v131_v56 = vrot.slane %v130_v52, 1  ;;  %v160_v57 = vadd.f32 %v159_v53, %v158_v49  ;;  %v138_v58 = vrot.slane %v137_v54, 1  ;;  %v167_v59 = vadd.f32 %v166_v55, %v165_v51 }
  0xb4   :  { %v161_v60 = vrot.slane %v160_v57, 1  ;;  %v139_v61 = vadd.f32 %v138_v58, %v137_v54  ;;  %v168_v62 = vrot.slane %v167_v59, 1  ;;  %v132_v0 = vadd.f32 %v131_v56, %v130_v52 }
  0xb6   :  { %v142_v2 = vrot.slane %v139_v61, 7  ;;  %v169_v3 = vadd.f32 %v168_v62, %v167_v59  ;;  %v162_v4 = vadd.f32 %v161_v60, %v160_v57 }
  0xb8   :  { %v144_v5 = vsel %vm143_vm1, %v132_v0, %v142_v2  ;;  %v172_v6 = vrot.slane %v169_v3, 7 }
  0xb9   :  { %v146_v8 = vadd.f32 %v144_v5, %v124_v1 }
  0xba   :  { %v173_v9 = vsel %vm143_vm1, %v162_v4, %v172_v6 }
  0xbb   :  { %151 = vst.msk [vmem:[#allocation7] ss:$2 sm:$0x3] %vm149_vm2, %v146_v8  ;;  %v175_v10 = vadd.f32 %v173_v9, %v153_v7 }
  0xbd   :  { %176 = vst.msk [vmem:[#allocation7 + $0x1] ss:$2 sm:$0x3] %vm149_vm2, %v175_v10 }
  0xbe   :  { %187 = dma.vmem_to_hbm [thread:$0]  %s183_s1, 64, %s185_s23, [#allocation4]  }
  0xbf   :  { %277 = dma.done.wait [#allocation4], 64  }
  0xc0   :  { %278 = vsyncadd [#allocation4], 4294967232 }
  0xc1   :  { %192 = vsyncpa [#allocation3], 1 }
  0xc2   :  { %193 = vsyncpa [#allocation6], 1 }
  0xc3   :  { %194 = vsyncpa [#allocation4], 1 }

</bundles_post_ra>
